<compile_context>
chip_gen: v7x
topology: tpu7x:2x2x1
jax: 0.10.0
libtpu: 0.0.40
codegen_flags: <defaults>
</compile_context>

<pallas_src>
import jax
import jax.numpy as jnp
from jax.experimental import pallas as pl
from jax.experimental.pallas import tpu as pltpu


def _cdiv(a, b):
    return (a + b - 1) // b


def _round_up(x, m):
    return _cdiv(x, m) * m


def _padded_tile_bytes(rows, cols, itemsize):
    # Conservative (8, 128)-tile footprint; sub-32-bit dtypes pack tighter,
    # so this only over-estimates.
    return _round_up(max(rows, 1), 8) * _round_up(max(cols, 1), 128) * itemsize


def _device_kind():
    try:
        return jax.local_devices()[0].device_kind.lower()
    except Exception:
        return ""


def _chip_traits():
    """Generation-aware VMEM budget, row-tile cap and TensorCore count."""
    kind = _device_kind()
    is_v7 = ("v7" in kind) or ("7x" in kind)
    two_tc = is_v7 or ("v4" in kind) or ("v5p" in kind)

    try:
        cap = int(pltpu.get_tpu_info().vmem_capacity_bytes)
    except Exception:
        # Generation-aware fallback (AOT/mock): only v7x gets the 64 MiB guess.
        cap = (64 if is_v7 else 128) * 1024 * 1024

    budget = int(cap * 0.7)
    # Bigger row tiles amortize the ~0.35 us/step overhead (matters most at
    # v7x's 3.2 TB/s); v7x has half the VMEM, so cap it lower.
    tm_cap = 1024 if (is_v7 or not kind) else 2048
    return budget, tm_cap, two_tc


def _pick_tiles(M, dim, rank, in_bytes, out_bytes, a_bytes, b_bytes, xa_bytes):
    budget, tm_cap, two_tc = _chip_traits()

    # Column tile: whole row when modest (one j step, lane-dense stores);
    # otherwise a fixed 2048-lane tile (multiple of 256 for the MXU) with the
    # last partial block clipped by Pallas -- no dependence on dim's divisors.
    tn = dim if dim <= 4096 else 2048

    # Weight tiles (double-buffered by the pipeline) -- constant w.r.t. tm.
    fixed = (2 * _padded_tile_bytes(dim, rank, a_bytes)
             + 2 * _padded_tile_bytes(rank, tn, b_bytes))

    # Per-row cost: double-buffered x tile + out tile + (tm, rank) scratch.
    per_row = (2 * _round_up(dim, 128) * in_bytes
               + 2 * _round_up(tn, 128) * out_bytes
               + _round_up(rank, 128) * xa_bytes)

    avail = budget - fixed
    if avail < 8 * per_row:
        return None  # weights alone (nearly) blow VMEM -> caller falls back

    tm = min(tm_cap, avail // per_row, _round_up(M, 8))
    tm = max(8, (tm // 8) * 8)

    # Only force a row split when the chip actually has 2 TensorCores to feed;
    # on single-TC v5e/v6e the split is pure per-step overhead.
    if two_tc and _cdiv(M, tm) < 2 and M >= 16:
        tm = max(8, _round_up(_cdiv(M, 2), 8))

    need = fixed + per_row * tm
    vmem_limit = int(min(budget + budget // 3,
                         need + max(need // 2, 2 << 20)))
    return tm, tn, vmem_limit


def lora_kernel(x_ref, a_ref, b_ref, o_ref, xa_ref):
    # The (tm, dim) x block is revisited across the column axis j: compute the
    # small (tm, rank) low-rank intermediate once per row block.  alpha is
    # already folded into b by the wrapper, so no in-kernel scaling is needed.
    @pl.when(pl.program_id(1) == 0)
    def _():
        xa_ref[...] = jnp.dot(
            x_ref[...], a_ref[...], preferred_element_type=jnp.float32
        ).astype(xa_ref.dtype)

    o_ref[...] = jnp.dot(
        xa_ref[...], b_ref[...], preferred_element_type=jnp.float32
    ).astype(o_ref.dtype)


def lora_forward(inputs, a, b, alpha):
    """LoRA forward: (inputs @ a) @ b * alpha.  inputs: (..., dim)."""
    dim, rank = a.shape
    assert inputs.shape[-1] == dim and b.shape == (rank, dim)

    lead_shape = inputs.shape[:-1]
    x = inputs.reshape(-1, dim)
    M = x.shape[0]
    out_dtype = inputs.dtype

    # Fold alpha into b (rank*dim elements -> negligible one-time wrapper
    # cost, unlike pre-scaling a large activation).
    b_scaled = b.astype(jnp.float32) * jnp.asarray(alpha, jnp.float32)

    # Keep both matmuls on the native MXU path: bf16 x bf16 with f32
    # accumulation when the activations are bf16, pure f32 otherwise.
    compute_dtype = jnp.bfloat16 if x.dtype == jnp.bfloat16 else jnp.float32
    # TODO(synk): optionally force bf16 compute for f32 activations on v5e,
    # where the f32 MXU path can become co-binding with the DMA.
    a_k = a.astype(compute_dtype)
    b_k = b_scaled.astype(compute_dtype)

    in_bytes = jnp.dtype(x.dtype).itemsize
    out_bytes = jnp.dtype(out_dtype).itemsize
    a_bytes = jnp.dtype(a_k.dtype).itemsize
    b_bytes = jnp.dtype(b_k.dtype).itemsize
    xa_bytes = jnp.dtype(compute_dtype).itemsize

    tiles = _pick_tiles(M, dim, rank, in_bytes, out_bytes, a_bytes, b_bytes,
                        xa_bytes)
    if tiles is None or M == 0:
        # Pathological sizes (weights alone exceed the VMEM budget): plain XLA.
        out = jnp.dot(jnp.dot(x, a_k), b_k).astype(out_dtype)
        return out.reshape(*lead_shape, dim)
    tm, tn, vmem_limit = tiles

    # cdiv grids: Pallas clips the final partial row/column block, so there is
    # no wrapper-side padding of x and no out[:M] slice.
    grid = (pl.cdiv(M, tm), pl.cdiv(dim, tn))

    cost = pl.CostEstimate(
        flops=4 * M * dim * rank,
        bytes_accessed=(M * dim * (in_bytes + out_bytes)
                        + dim * rank * (a_bytes + b_bytes)),
        transcendentals=0,
    )

    out = pl.pallas_call(
        lora_kernel,
        out_shape=jax.ShapeDtypeStruct((M, dim), out_dtype),
        grid_spec=pltpu.PrefetchScalarGridSpec(
            num_scalar_prefetch=0,
            grid=grid,
            in_specs=[
                pl.BlockSpec((tm, dim), lambda i, j: (i, 0)),   # revisited on j
                pl.BlockSpec((dim, rank), lambda i, j: (0, 0)),
                pl.BlockSpec((rank, tn), lambda i, j: (0, j)),
            ],
            out_specs=pl.BlockSpec((tm, tn), lambda i, j: (i, j)),
            scratch_shapes=[pltpu.VMEM((tm, rank), compute_dtype)],
        ),
        compiler_params=pltpu.CompilerParams(
            dimension_semantics=("parallel", "arbitrary"),
            vmem_limit_bytes=vmem_limit,
        ),
        cost_estimate=cost,
    )(x, a_k, b_k)

    return out.reshape(*lead_shape, dim)


if __name__ == "__main__":
    batch, seq, dim, rank = 2, 8, 32, 4

    key = jax.random.PRNGKey(0)
    k_x, k_a, k_b = jax.random.split(key, 3)

    # Deterministic parameter init matching the module's __init__:
    #   a ~ randn(dim, rank), b = zeros(rank, dim), alpha = rank / rank = 1.0
    a = jax.random.normal(k_a, (dim, rank), dtype=jnp.float32)
    b = jnp.zeros((rank, dim), dtype=jnp.float32)
    alpha = jnp.float32(rank) / jnp.float32(rank)

    x = jax.random.normal(k_x, (batch, seq, dim), dtype=jnp.float32)

    out = lora_forward(x, a, b, alpha)
    out = jax.block_until_ready(out)
    ref = (x @ a) @ b * alpha
    assert out.shape == (batch, seq, dim)
    assert jnp.allclose(out, ref, atol=1e-5, rtol=1e-5)

    # Extra numerics check with a non-zero b (same forward semantics) so the
    # test is not trivially zero.
    b_nz = jax.random.normal(k_b, (rank, dim), dtype=jnp.float32)
    out_nz = jax.block_until_ready(lora_forward(x, a, b_nz, alpha))
    ref_nz = (x @ a) @ b_nz * alpha
    assert jnp.allclose(out_nz, ref_nz, atol=1e-4, rtol=1e-4)

    # Ragged-row check: M not a multiple of the row tile exercises the
    # Pallas-clipped partial block path (no wrapper pad/slice).
    x_odd = jax.random.normal(k_x, (3, 5, dim), dtype=jnp.float32)
    out_odd = jax.block_until_ready(lora_forward(x_odd, a, b_nz, alpha))
    ref_odd = (x_odd @ a) @ b_nz * alpha
    assert jnp.allclose(out_odd, ref_odd, atol=1e-4, rtol=1e-4)

    print("KERNEL_OK")
</pallas_src>

<mosaic_0001>
module attributes {stable_mosaic.version = 11 : i64} {
  func.func @lora_kernel(%arg0: i32, %arg1: i32, %arg2: memref<16x32xf32, #tpu.memory_space<vmem>>, %arg3: memref<32x4xf32, #tpu.memory_space<vmem>>, %arg4: memref<4x32xf32, #tpu.memory_space<vmem>>, %arg5: memref<16x32xf32, #tpu.memory_space<vmem>>, %arg6: memref<16x4xf32, #tpu.memory_space<vmem>>) attributes {dimension_semantics = [#tpu.dimension_semantics<parallel>, #tpu.dimension_semantics<arbitrary>], iteration_bounds = array<i64: 1, 1>, scalar_prefetch = 0 : i64, scratch_operands = 1 : i64, tpu.core_type = #tpu.core_type<tc>, window_params = [{transform_indices = @transform_0, window_bounds = array<i64: 16, 32>}, {pipeline_mode = #tpu.pipeline_mode<synchronous>, transform_indices = @transform_1, window_bounds = array<i64: 32, 4>}, {transform_indices = @transform_2, window_bounds = array<i64: 4, 32>}, {transform_indices = @transform_3, window_bounds = array<i64: 16, 32>}]} {
    %c0_i32 = arith.constant 0 : i32
    %0 = arith.cmpi eq, %arg1, %c0_i32 : i32
    %1 = arith.extui %0 : i1 to i32
    %c0_i32_0 = arith.constant 0 : i32
    %2 = arith.cmpi ne, %1, %c0_i32_0 : i32
    scf.if %2 {
      %c0_6 = arith.constant 0 : index
      %c0_7 = arith.constant 0 : index
      %7 = vector.load %arg2[%c0_6, %c0_7] : memref<16x32xf32, #tpu.memory_space<vmem>>, vector<16x32xf32>
      %c0_8 = arith.constant 0 : index
      %c0_9 = arith.constant 0 : index
      %8 = vector.load %arg3[%c0_8, %c0_9] : memref<32x4xf32, #tpu.memory_space<vmem>>, vector<32x4xf32>
      %cst_10 = arith.constant dense<0.000000e+00> : vector<16x4xf32>
      %9 = tpu.matmul %7, %8, %cst_10 {dimension_numbers = #tpu.dot_dimension_numbers<[1], [0], [0], [1], [0, 0, 1, 1], [], []>} : vector<16x32xf32>, vector<32x4xf32>, vector<16x4xf32> -> vector<16x4xf32>
      %c0_11 = arith.constant 0 : index
      %c0_12 = arith.constant 0 : index
      %10 = vector.load %arg6[%c0_11, %c0_12] : memref<16x4xf32, #tpu.memory_space<vmem>>, vector<16x4xf32>
      tpu.vector_store %arg6[%c0_11, %c0_12], %9 {strides = array<i32>} : memref<16x4xf32, #tpu.memory_space<vmem>>, vector<16x4xf32>,
    } else {
    }
    %c0 = arith.constant 0 : index
    %c0_1 = arith.constant 0 : index
    %3 = vector.load %arg6[%c0, %c0_1] : memref<16x4xf32, #tpu.memory_space<vmem>>, vector<16x4xf32>
    %c0_2 = arith.constant 0 : index
    %c0_3 = arith.constant 0 : index
    %4 = vector.load %arg4[%c0_2, %c0_3] : memref<4x32xf32, #tpu.memory_space<vmem>>, vector<4x32xf32>
    %cst = arith.constant dense<0.000000e+00> : vector<16x32xf32>
    %5 = tpu.matmul %3, %4, %cst {dimension_numbers = #tpu.dot_dimension_numbers<[1], [0], [0], [1], [0, 0, 1, 1], [], []>} : vector<16x4xf32>, vector<4x32xf32>, vector<16x32xf32> -> vector<16x32xf32>
    %c0_4 = arith.constant 0 : index
    %c0_5 = arith.constant 0 : index
    %6 = vector.load %arg5[%c0_4, %c0_5] : memref<16x32xf32, #tpu.memory_space<vmem>>, vector<16x32xf32>
    tpu.vector_store %arg5[%c0_4, %c0_5], %5 {strides = array<i32>} : memref<16x32xf32, #tpu.memory_space<vmem>>, vector<16x32xf32>,
    return
  }
  func.func @transform_0(%arg0: i32, %arg1: i32) -> (i32, i32) {
    %c0_i32 = arith.constant 0 : i32
    %c0_i32_0 = arith.constant 0 : i32
    return %arg0, %c0_i32 : i32, i32
  }
  func.func @transform_1(%arg0: i32, %arg1: i32) -> (i32, i32) {
    %c0_i32 = arith.constant 0 : i32
    %c0_i32_0 = arith.constant 0 : i32
    %c0_i32_1 = arith.constant 0 : i32
    return %c0_i32, %c0_i32_0 : i32, i32
  }
  func.func @transform_2(%arg0: i32, %arg1: i32) -> (i32, i32) {
    %c0_i32 = arith.constant 0 : i32
    %c0_i32_0 = arith.constant 0 : i32
    return %c0_i32, %arg1 : i32, i32
  }
  func.func @transform_3(%arg0: i32, %arg1: i32) -> (i32, i32) {
    %c0_i32 = arith.constant 0 : i32
    return %arg0, %arg1 : i32, i32
  }
}

</mosaic_0001>

<bundles_post_ra>
// kernel: tpu_custom_call.1
= control target key start
LH: loop header
LB: loop body
LE: loop exit
PB: predicated region body
PF: predicated region fallthrough
CT: control target
= control target key end

     0   :  { %vm25_vm0 = vcmask 261120   ;;  %s343_s0 = inlined_call_operand.vmem [shape: f32[16,32], index: 0, kind: input, shape index: {}]   ;;  %s344_s1 = inlined_call_operand.vmem [shape: f32[32,4], index: 1, kind: input, shape index: {}]   ;;  %s345_s2 = inlined_call_operand.vmem [shape: f32[4,32], index: 2, kind: input, shape index: {}]   ;;  %s346_s3 = inlined_call_operand.hbm [shape: f32[16,32], index: 3, kind: output, shape index: {}]  }
   0x1   :  { %v21_v0 = vld [vmem:[%s344_s1] sm:$0xff]  ;;  %v22_v1 = vld [vmem:[%s344_s1 + $0x8] sm:$0xff]  ;;  %v23_v2 = vld [vmem:[%s344_s1 + $0x10] sm:$0xff] }
   0x2   :  { %v248_v3 = vpack.c.bf16 %v22_v1, %v21_v0  ;;  %v24_v4 = vld [vmem:[%s344_s1 + $0x18] sm:$0xff]  ;;  %v19_v5 = vld [vmem:[%s343_s0] sm:$0xff] }
   0x3   :  { %v252_v6 = vpack.c.bf16 %v24_v4, %v23_v2  ;;  %240 = vmatprep.mubr.msk.f32.mxu0 %vm25_vm0, %v19_v5 }
   0x4   :  { %8 = vsyncpa [#allocation4], 0  ;;  %249 = vmatprep.subr.bf16.mxu0 %v248_v3  ;;  %v20_v7 = vld [vmem:[%s343_s0 + $0x8] sm:$0xff]  ;;  %v112_v8 = vld [vmem:[%s345_s2] sm:$0xf]  ;;  %vm120_vm1 = vcmask 1043456  }
   0x5   :  { %251 = vmatpush3.bf16.msra.mxu0 %v248_v3  ;;  %243 = vmatprep.subr.msk.mxu1 %vm120_vm1, %v112_v8  ;;  %vm107_vm2 = vcmask 31744   ;;  %s283_s25 = smov [#allocation3]  }
   0x6   :  { %253 = vmatprep.subr.bf16.mxu0 %v252_v6  ;;  %244 = vmatpush3.msk.msra.mxu1 %vm120_vm1, %v112_v8  ;;  %s207_s0 = sshll.u32 %s283_s25, 4  ;;  %s208_s0 = int_to_ptr.vmem [resolvable:$true] %s207_s0 }
   0x7   :  { %s259_s2 = scalar_lea.vmem %s208_s0, 256  ;;  %p264_p1 = scmp.lt.s32.totalorder %s208_s0, %s208_s0 }
   0x8   :  { %p260_p0 = scmp.ne.s32.totalorder %s208_s0, %s259_s2  ;;  %p265_p2 = scmp.lt.s32.totalorder %s259_s2, %s259_s2 }
   0x9   :  { %255 = vmatpush3.bf16.msra.mxu0 %v252_v6 }
   0xa   :  { %p266_p3 = por %p265_p2, %p264_p1 }
   0xc   :  { %241 = vmatmul.mubr.msk.f32.vlgmr.msra.gmra.mrb[0].mxu0 %vm25_vm0, %v20_v7  ;;  %p267_p4 = pnand %p266_p3, %p260_p0 }
  0xdf   :  { %v242_v9 = vpop.f32.mrb[0].mxu0 }
  0xe0   :  { %109 = vst.msk [vmem:[#allocation2 + $0x8] sm:$0xff] %vm107_vm2, %v242_v9  ;;  %v98_v10 = vpop.f32.mrb[1].mxu0 }
  0xe1   :  { %108 = vst.msk [vmem:[#allocation2] sm:$0xff] %vm107_vm2, %v98_v10 }
  0xe7   :  { %v111_v12 = vld [vmem:[#allocation2 + $0x8] sm:$0xff] }
  0xe8   :  { %v110_v11 = vld [vmem:[#allocation2] sm:$0xff] }
  0xe9   :  { %245 = vmatprep.mubr.msk.f32.mxu1 %vm107_vm2, %v110_v11 }
  0xea   :  { %246 = vmatmul.mubr.msk.f32.vlgmr.msra.gmra.mrb[0].mxu1 %vm107_vm2, %v111_v12 }
 0x1bd   :  { %v247_v13 = vpop.f32.mrb[0].mxu1 }
 0x1be   :  { %201 = vst.msk [vmem:[#allocation3 + $0x8] sm:$0xff] %vm25_vm0, %v247_v13  ;;  %v190_v14 = vpop.f32.mrb[1].mxu1 }
 0x1bf   :  { %200 = vst.msk [vmem:[#allocation3] sm:$0xff] %vm25_vm0, %v190_v14 }
 0x1c0   :  { %270 = shalt.err (!%p267_p4)
}
 0x1c1   :  { %s271_s28 = scalar_lea.hbm %s346_s3, 256 }
 0x1c2   :  { %p272_p5 = scmp.ne.s32.totalorder %s346_s3, %s271_s28  ;;  %p275_p6 = scmp.lt.u32.totalorder %s271_s28, %s346_s3 }
 0x1c4   :  { %p277_p7 = pnand %p275_p6, %p272_p5 }
 0x1c6   :  { %280 = shalt.err (!%p277_p7)
}
 0x1c7   :  { %s284_s6 = smov 128   ;;  %s285_s7 = smov 8  }
 0x1c8   :  { %213 = dma.vmem_to_hbm [thread:$0]  %s208_s0, 256, %s346_s3, [#allocation4], %s284_s6, %s284_s6, %s285_s7  }
 0x1c9   :  { %281 = dma.done.wait [#allocation4], 256  }
 0x1ca   :  { %282 = vsyncadd [#allocation4], 4294967040 }
 0x1cb   :  { %217 = vsyncpa [#allocation4], 1 }

</bundles_post_ra>
